<compile_context>
chip_gen: v5e
topology: v5e:2x2
jax: 0.10.0
libtpu: 0.0.40
codegen_flags: <defaults>
</compile_context>

<pallas_src>
import functools
import math

import jax
import jax.numpy as jnp
import numpy as np
from jax import lax
from jax.experimental import pallas as pl
from jax.experimental.pallas import tpu as pltpu

EPS = 1e-5


def _layernorm(x, gamma, beta):
    mu = jnp.mean(x, axis=-1, keepdims=True)
    var = jnp.mean((x - mu) ** 2, axis=-1, keepdims=True)
    return (x - mu) * lax.rsqrt(var + EPS) * gamma + beta


def transformer_rpe_kernel(
    x_ref,
    ln1_g_ref, ln1_b_ref,
    wq_ref, bq_ref, wk_ref, bk_ref, wv_ref, bv_ref, wo_ref, bo_ref,
    ln2_g_ref, ln2_b_ref,
    w1_ref, b1_ref, w2_ref, b2_ref,
    out_ref,
    *, n_head: int,
):
    x = x_ref[0]                              # [S, D] float32
    S, D = x.shape
    dh = D // n_head
    scale = 1.0 / math.sqrt(dh)

    # ----- norm1 (f32 elementwise) -----
    x2 = _layernorm(x, ln1_g_ref[...], ln1_b_ref[...])
    x2b = x2.astype(jnp.bfloat16)

    # ----- QKV projections: full [S,D]x[D,D] bf16 matmuls, f32 accumulation -----
    q = jnp.dot(x2b, wq_ref[...], preferred_element_type=jnp.float32) + bq_ref[...]
    k = jnp.dot(x2b, wk_ref[...], preferred_element_type=jnp.float32) + bk_ref[...]
    v = jnp.dot(x2b, wv_ref[...], preferred_element_type=jnp.float32) + bv_ref[...]
    q = q * scale                             # fold 1/sqrt(dh) into q once

    qb = q.astype(jnp.bfloat16)
    kb = k.astype(jnp.bfloat16)
    vb = v.astype(jnp.bfloat16)

    # Head-batched views [H, S, dh] via static slices stacked on a new major axis.
    q3 = jnp.stack([qb[:, h * dh:(h + 1) * dh] for h in range(n_head)], axis=0)
    k3 = jnp.stack([kb[:, h * dh:(h + 1) * dh] for h in range(n_head)], axis=0)
    v3 = jnp.stack([vb[:, h * dh:(h + 1) * dh] for h in range(n_head)], axis=0)

    # ----- attention: single batched matmul over all heads, contract last dims -----
    s = jnp.einsum('hqd,hkd->hqk', q3, k3,
                   preferred_element_type=jnp.float32)             # [H, S, S] f32
    m = jnp.max(s, axis=-1, keepdims=True)
    p = jnp.exp(s - m)
    denom = jnp.sum(p, axis=-1, keepdims=True)
    p = p * pl.reciprocal(denom, approx=True)                      # EUP reciprocal

    o3 = jnp.einsum('hqk,hkd->hqd', p.astype(jnp.bfloat16), v3,
                    preferred_element_type=jnp.float32)            # [H, S, dh]
    attn = jnp.concatenate([o3[h] for h in range(n_head)], axis=-1)  # [S, D]
    attn = jnp.dot(attn.astype(jnp.bfloat16), wo_ref[...],
                   preferred_element_type=jnp.float32) + bo_ref[...]

    # residual
    x = x + attn

    # ----- norm2 + feed-forward (ReLU) -----
    x2 = _layernorm(x, ln2_g_ref[...], ln2_b_ref[...])
    h1 = jnp.dot(x2.astype(jnp.bfloat16), w1_ref[...],
                 preferred_element_type=jnp.float32) + b1_ref[...]
    h1 = jnp.maximum(h1, 0.0)
    h2 = jnp.dot(h1.astype(jnp.bfloat16), w2_ref[...],
                 preferred_element_type=jnp.float32) + b2_ref[...]

    out_ref[0] = x + h2


def transformer_rpe_forward(src, params, n_head):
    """src: [B, S, D] float32.  Returns [B, S, D] float32."""
    B, S, D = src.shape

    def bf(a):
        return a.astype(jnp.bfloat16)

    # Matmul weights in bf16 (MXU operands); biases / LN params stay f32.
    weight_args = [
        params["ln1_g"], params["ln1_b"],
        bf(params["wq"]), params["bq"], bf(params["wk"]), params["bk"],
        bf(params["wv"]), params["bv"], bf(params["wo"]), params["bo"],
        params["ln2_g"], params["ln2_b"],
        bf(params["w1"]), params["b1"], bf(params["w2"]), params["b2"],
    ]

    # Whole-array, VMEM-resident, single-buffered weights (no per-step re-DMA).
    vmem_full = pl.BlockSpec(memory_space=pltpu.MemorySpace.VMEM)
    in_specs = [pl.BlockSpec((1, S, D), lambda b: (b, 0, 0))]
    in_specs += [vmem_full] * len(weight_args)

    kernel = functools.partial(transformer_rpe_kernel, n_head=n_head)

    return pl.pallas_call(
        kernel,
        out_shape=jax.ShapeDtypeStruct((B, S, D), jnp.float32),
        grid=(B,),
        in_specs=in_specs,
        out_specs=pl.BlockSpec((1, S, D), lambda b: (b, 0, 0)),
        compiler_params=pltpu.CompilerParams(
            dimension_semantics=("parallel",),
            vmem_limit_bytes=48 * 1024 * 1024,
        ),
    )(src, *weight_args)


def transformer_rpe_reference(src, params, n_head):
    """Plain-JAX f32 reference mirroring the PyTorch forward (same config)."""
    B, S, D = src.shape
    dh = D // n_head
    scale = 1.0 / math.sqrt(dh)

    x2 = _layernorm(src, params["ln1_g"], params["ln1_b"])
    q = x2 @ params["wq"] + params["bq"]
    k = x2 @ params["wk"] + params["bk"]
    v = x2 @ params["wv"] + params["bv"]
    q = q.reshape(B, S, n_head, dh).transpose(0, 2, 1, 3)
    k = k.reshape(B, S, n_head, dh).transpose(0, 2, 1, 3)
    v = v.reshape(B, S, n_head, dh).transpose(0, 2, 1, 3)
    s = jnp.einsum("bhqd,bhkd->bhqk", q, k) * scale
    p = jax.nn.softmax(s, axis=-1)
    attn = jnp.einsum("bhqk,bhkd->bhqd", p, v).transpose(0, 2, 1, 3).reshape(B, S, D)
    attn = attn @ params["wo"] + params["bo"]
    x = src + attn
    x2 = _layernorm(x, params["ln2_g"], params["ln2_b"])
    h1 = jax.nn.relu(x2 @ params["w1"] + params["b1"])
    h2 = h1 @ params["w2"] + params["b2"]
    return x + h2


def init_params(key, d_model, n_head, k_feedforward):
    d_ff = k_feedforward * d_model
    keys = jax.random.split(key, 12)

    def w(k, shape, scale=0.1):
        return (scale * jax.random.normal(k, shape)).astype(jnp.float32)

    # Linear weights stored as [in, out] (PyTorch stores [out, in]; y = x W + b either way).
    return {
        "ln1_g": jnp.ones((1, d_model), jnp.float32),
        "ln1_b": jnp.zeros((1, d_model), jnp.float32),
        "wq": w(keys[0], (d_model, d_model)), "bq": w(keys[1], (1, d_model)),
        "wk": w(keys[2], (d_model, d_model)), "bk": w(keys[3], (1, d_model)),
        "wv": w(keys[4], (d_model, d_model)), "bv": w(keys[5], (1, d_model)),
        "wo": w(keys[6], (d_model, d_model)), "bo": w(keys[7], (1, d_model)),
        "ln2_g": jnp.ones((1, d_model), jnp.float32),
        "ln2_b": jnp.zeros((1, d_model), jnp.float32),
        "w1": w(keys[8], (d_model, d_ff)), "b1": w(keys[9], (1, d_ff)),
        "w2": w(keys[10], (d_ff, d_model)), "b2": w(keys[11], (1, d_model)),
    }


if __name__ == "__main__":
    B, S, D = 2, 8, 32        # n_batch, n_src, d_model
    n_head = 4
    k_feedforward = 2

    key = jax.random.PRNGKey(0)
    kx, kp = jax.random.split(key)
    src = jax.random.normal(kx, (B, S, D), dtype=jnp.float32)
    params = init_params(kp, D, n_head, k_feedforward)

    out = transformer_rpe_forward(src, params, n_head)
    out = jax.block_until_ready(out)

    ref = transformer_rpe_reference(src, params, n_head)
    # bf16 MXU operands + approx reciprocal => compare against the f32 reference
    # with a tolerance that covers the reduced-precision matmuls.
    np.testing.assert_allclose(np.asarray(out), np.asarray(ref), rtol=5e-2, atol=5e-2)

    print("KERNEL_OK")
</pallas_src>

<mosaic_0001>
module attributes {stable_mosaic.version = 11 : i64} {
  func.func @transformer_rpe_kernel(%arg0: i32, %arg1: memref<1x8x32xf32, #tpu.memory_space<vmem>>, %arg2: memref<1x32xf32, #tpu.memory_space<vmem>>, %arg3: memref<1x32xf32, #tpu.memory_space<vmem>>, %arg4: memref<32x32xbf16, #tpu.memory_space<vmem>>, %arg5: memref<1x32xf32, #tpu.memory_space<vmem>>, %arg6: memref<32x32xbf16, #tpu.memory_space<vmem>>, %arg7: memref<1x32xf32, #tpu.memory_space<vmem>>, %arg8: memref<32x32xbf16, #tpu.memory_space<vmem>>, %arg9: memref<1x32xf32, #tpu.memory_space<vmem>>, %arg10: memref<32x32xbf16, #tpu.memory_space<vmem>>, %arg11: memref<1x32xf32, #tpu.memory_space<vmem>>, %arg12: memref<1x32xf32, #tpu.memory_space<vmem>>, %arg13: memref<1x32xf32, #tpu.memory_space<vmem>>, %arg14: memref<32x64xbf16, #tpu.memory_space<vmem>>, %arg15: memref<1x64xf32, #tpu.memory_space<vmem>>, %arg16: memref<64x32xbf16, #tpu.memory_space<vmem>>, %arg17: memref<1x32xf32, #tpu.memory_space<vmem>>, %arg18: memref<1x8x32xf32, #tpu.memory_space<vmem>>) attributes {dimension_semantics = [#tpu.dimension_semantics<parallel>], iteration_bounds = array<i64: 2>, scalar_prefetch = 0 : i64, scratch_operands = 0 : i64, tpu.core_type = #tpu.core_type<tc>, window_params = [{transform_indices = @transform_0, window_bounds = array<i64: 1, 8, 32>}, {pipeline_mode = #tpu.pipeline_mode<synchronous>, transform_indices = @transform_1, window_bounds = array<i64: 1, 32>}, {pipeline_mode = #tpu.pipeline_mode<synchronous>, transform_indices = @transform_2, window_bounds = array<i64: 1, 32>}, {pipeline_mode = #tpu.pipeline_mode<synchronous>, transform_indices = @transform_3, window_bounds = array<i64: 32, 32>}, {pipeline_mode = #tpu.pipeline_mode<synchronous>, transform_indices = @transform_4, window_bounds = array<i64: 1, 32>}, {pipeline_mode = #tpu.pipeline_mode<synchronous>, transform_indices = @transform_5, window_bounds = array<i64: 32, 32>}, {pipeline_mode = #tpu.pipeline_mode<synchronous>, transform_indices = @transform_6, window_bounds = array<i64: 1, 32>}, {pipeline_mode = #tpu.pipeline_mode<synchronous>, transform_indices = @transform_7, window_bounds = array<i64: 32, 32>}, {pipeline_mode = #tpu.pipeline_mode<synchronous>, transform_indices = @transform_8, window_bounds = array<i64: 1, 32>}, {pipeline_mode = #tpu.pipeline_mode<synchronous>, transform_indices = @transform_9, window_bounds = array<i64: 32, 32>}, {pipeline_mode = #tpu.pipeline_mode<synchronous>, transform_indices = @transform_10, window_bounds = array<i64: 1, 32>}, {pipeline_mode = #tpu.pipeline_mode<synchronous>, transform_indices = @transform_11, window_bounds = array<i64: 1, 32>}, {pipeline_mode = #tpu.pipeline_mode<synchronous>, transform_indices = @transform_12, window_bounds = array<i64: 1, 32>}, {pipeline_mode = #tpu.pipeline_mode<synchronous>, transform_indices = @transform_13, window_bounds = array<i64: 32, 64>}, {pipeline_mode = #tpu.pipeline_mode<synchronous>, transform_indices = @transform_14, window_bounds = array<i64: 1, 64>}, {pipeline_mode = #tpu.pipeline_mode<synchronous>, transform_indices = @transform_15, window_bounds = array<i64: 64, 32>}, {pipeline_mode = #tpu.pipeline_mode<synchronous>, transform_indices = @transform_16, window_bounds = array<i64: 1, 32>}, {transform_indices = @transform_17, window_bounds = array<i64: 1, 8, 32>}]} {
    %c0 = arith.constant 0 : index
    %c0_0 = arith.constant 0 : index
    %c0_1 = arith.constant 0 : index
    %0 = vector.load %arg1[%c0, %c0_0, %c0_1] : memref<1x8x32xf32, #tpu.memory_space<vmem>>, vector<1x8x32xf32>
    %1 = vector.shape_cast %0 : vector<1x8x32xf32> to vector<8x32xf32>
    %c0_2 = arith.constant 0 : index
    %c0_3 = arith.constant 0 : index
    %2 = vector.load %arg2[%c0_2, %c0_3] : memref<1x32xf32, #tpu.memory_space<vmem>>, vector<1x32xf32>
    %c0_4 = arith.constant 0 : index
    %c0_5 = arith.constant 0 : index
    %3 = vector.load %arg3[%c0_4, %c0_5] : memref<1x32xf32, #tpu.memory_space<vmem>>, vector<1x32xf32>
    %cst = arith.constant dense<0.000000e+00> : vector<8xf32>
    %4 = vector.multi_reduction <add>, %1, %cst [1] : vector<8x32xf32> to vector<8xf32>
    %5 = vector.shape_cast %4 : vector<8xf32> to vector<8x1xf32>
    %cst_6 = arith.constant 3.200000e+01 : f32
    %6 = vector.broadcast %cst_6 : f32 to vector<8x1xf32>
    %7 = arith.divf %5, %6 : vector<8x1xf32>
    %8 = vector.broadcast %7 : vector<8x1xf32> to vector<8x32xf32>
    %9 = arith.subf %1, %8 : vector<8x32xf32>
    %10 = arith.mulf %9, %9 : vector<8x32xf32>
    %cst_7 = arith.constant dense<0.000000e+00> : vector<8xf32>
    %11 = vector.multi_reduction <add>, %10, %cst_7 [1] : vector<8x32xf32> to vector<8xf32>
    %12 = vector.shape_cast %11 : vector<8xf32> to vector<8x1xf32>
    %cst_8 = arith.constant 3.200000e+01 : f32
    %13 = vector.broadcast %cst_8 : f32 to vector<8x1xf32>
    %14 = arith.divf %12, %13 : vector<8x1xf32>
    %15 = vector.broadcast %7 : vector<8x1xf32> to vector<8x32xf32>
    %16 = arith.subf %1, %15 : vector<8x32xf32>
    %cst_9 = arith.constant 9.99999974E-6 : f32
    %17 = vector.broadcast %cst_9 : f32 to vector<8x1xf32>
    %18 = arith.addf %14, %17 : vector<8x1xf32>
    %19 = math.rsqrt %18 : vector<8x1xf32>
    %20 = vector.broadcast %19 : vector<8x1xf32> to vector<8x32xf32>
    %21 = arith.mulf %16, %20 : vector<8x32xf32>
    %22 = vector.broadcast %2 : vector<1x32xf32> to vector<8x32xf32>
    %23 = arith.mulf %21, %22 : vector<8x32xf32>
    %24 = vector.broadcast %3 : vector<1x32xf32> to vector<8x32xf32>
    %25 = arith.addf %23, %24 : vector<8x32xf32>
    %26 = arith.truncf %25 : vector<8x32xf32> to vector<8x32xbf16>
    %c0_10 = arith.constant 0 : index
    %c0_11 = arith.constant 0 : index
    %27 = vector.load %arg4[%c0_10, %c0_11] : memref<32x32xbf16, #tpu.memory_space<vmem>>, vector<32x32xbf16>
    %cst_12 = arith.constant dense<0.000000e+00> : vector<8x32xf32>
    %28 = tpu.matmul %26, %27, %cst_12 {dimension_numbers = #tpu.dot_dimension_numbers<[1], [0], [0], [1], [0, 0, 1, 1], [], []>} : vector<8x32xbf16>, vector<32x32xbf16>, vector<8x32xf32> -> vector<8x32xf32>
    %c0_13 = arith.constant 0 : index
    %c0_14 = arith.constant 0 : index
    %29 = vector.load %arg5[%c0_13, %c0_14] : memref<1x32xf32, #tpu.memory_space<vmem>>, vector<1x32xf32>
    %30 = vector.broadcast %29 : vector<1x32xf32> to vector<8x32xf32>
    %31 = arith.addf %28, %30 : vector<8x32xf32>
    %c0_15 = arith.constant 0 : index
    %c0_16 = arith.constant 0 : index
    %32 = vector.load %arg6[%c0_15, %c0_16] : memref<32x32xbf16, #tpu.memory_space<vmem>>, vector<32x32xbf16>
    %cst_17 = arith.constant dense<0.000000e+00> : vector<8x32xf32>
    %33 = tpu.matmul %26, %32, %cst_17 {dimension_numbers = #tpu.dot_dimension_numbers<[1], [0], [0], [1], [0, 0, 1, 1], [], []>} : vector<8x32xbf16>, vector<32x32xbf16>, vector<8x32xf32> -> vector<8x32xf32>
    %c0_18 = arith.constant 0 : index
    %c0_19 = arith.constant 0 : index
    %34 = vector.load %arg7[%c0_18, %c0_19] : memref<1x32xf32, #tpu.memory_space<vmem>>, vector<1x32xf32>
    %35 = vector.broadcast %34 : vector<1x32xf32> to vector<8x32xf32>
    %36 = arith.addf %33, %35 : vector<8x32xf32>
    %c0_20 = arith.constant 0 : index
    %c0_21 = arith.constant 0 : index
    %37 = vector.load %arg8[%c0_20, %c0_21] : memref<32x32xbf16, #tpu.memory_space<vmem>>, vector<32x32xbf16>
    %cst_22 = arith.constant dense<0.000000e+00> : vector<8x32xf32>
    %38 = tpu.matmul %26, %37, %cst_22 {dimension_numbers = #tpu.dot_dimension_numbers<[1], [0], [0], [1], [0, 0, 1, 1], [], []>} : vector<8x32xbf16>, vector<32x32xbf16>, vector<8x32xf32> -> vector<8x32xf32>
    %c0_23 = arith.constant 0 : index
    %c0_24 = arith.constant 0 : index
    %39 = vector.load %arg9[%c0_23, %c0_24] : memref<1x32xf32, #tpu.memory_space<vmem>>, vector<1x32xf32>
    %40 = vector.broadcast %39 : vector<1x32xf32> to vector<8x32xf32>
    %41 = arith.addf %38, %40 : vector<8x32xf32>
    %cst_25 = arith.constant 0.353553385 : f32
    %42 = vector.broadcast %cst_25 : f32 to vector<8x32xf32>
    %43 = arith.mulf %31, %42 : vector<8x32xf32>
    %44 = arith.truncf %43 : vector<8x32xf32> to vector<8x32xbf16>
    %45 = arith.truncf %36 : vector<8x32xf32> to vector<8x32xbf16>
    %46 = arith.truncf %41 : vector<8x32xf32> to vector<8x32xbf16>
    %47 = vector.extract_strided_slice %44 {offsets = [0, 0], sizes = [8, 8], strides = [1, 1]} : vector<8x32xbf16> to vector<8x8xbf16>
    %48 = vector.extract_strided_slice %44 {offsets = [0, 8], sizes = [8, 8], strides = [1, 1]} : vector<8x32xbf16> to vector<8x8xbf16>
    %49 = vector.extract_strided_slice %44 {offsets = [0, 16], sizes = [8, 8], strides = [1, 1]} : vector<8x32xbf16> to vector<8x8xbf16>
    %50 = vector.extract_strided_slice %44 {offsets = [0, 24], sizes = [8, 8], strides = [1, 1]} : vector<8x32xbf16> to vector<8x8xbf16>
    %51 = vector.shape_cast %47 : vector<8x8xbf16> to vector<1x8x8xbf16>
    %52 = vector.shape_cast %48 : vector<8x8xbf16> to vector<1x8x8xbf16>
    %53 = vector.shape_cast %49 : vector<8x8xbf16> to vector<1x8x8xbf16>
    %54 = vector.shape_cast %50 : vector<8x8xbf16> to vector<1x8x8xbf16>
    %55 = tpu.concatenate %51, %52, %53, %54 in 0 : vector<1x8x8xbf16>, vector<1x8x8xbf16>, vector<1x8x8xbf16>, vector<1x8x8xbf16> -> vector<4x8x8xbf16>
    %56 = vector.extract_strided_slice %45 {offsets = [0, 0], sizes = [8, 8], strides = [1, 1]} : vector<8x32xbf16> to vector<8x8xbf16>
    %57 = vector.extract_strided_slice %45 {offsets = [0, 8], sizes = [8, 8], strides = [1, 1]} : vector<8x32xbf16> to vector<8x8xbf16>
    %58 = vector.extract_strided_slice %45 {offsets = [0, 16], sizes = [8, 8], strides = [1, 1]} : vector<8x32xbf16> to vector<8x8xbf16>
    %59 = vector.extract_strided_slice %45 {offsets = [0, 24], sizes = [8, 8], strides = [1, 1]} : vector<8x32xbf16> to vector<8x8xbf16>
    %60 = vector.shape_cast %56 : vector<8x8xbf16> to vector<1x8x8xbf16>
    %61 = vector.shape_cast %57 : vector<8x8xbf16> to vector<1x8x8xbf16>
    %62 = vector.shape_cast %58 : vector<8x8xbf16> to vector<1x8x8xbf16>
    %63 = vector.shape_cast %59 : vector<8x8xbf16> to vector<1x8x8xbf16>
    %64 = tpu.concatenate %60, %61, %62, %63 in 0 : vector<1x8x8xbf16>, vector<1x8x8xbf16>, vector<1x8x8xbf16>, vector<1x8x8xbf16> -> vector<4x8x8xbf16>
    %65 = vector.extract_strided_slice %46 {offsets = [0, 0], sizes = [8, 8], strides = [1, 1]} : vector<8x32xbf16> to vector<8x8xbf16>
    %66 = vector.extract_strided_slice %46 {offsets = [0, 8], sizes = [8, 8], strides = [1, 1]} : vector<8x32xbf16> to vector<8x8xbf16>
    %67 = vector.extract_strided_slice %46 {offsets = [0, 16], sizes = [8, 8], strides = [1, 1]} : vector<8x32xbf16> to vector<8x8xbf16>
    %68 = vector.extract_strided_slice %46 {offsets = [0, 24], sizes = [8, 8], strides = [1, 1]} : vector<8x32xbf16> to vector<8x8xbf16>
    %69 = vector.shape_cast %65 : vector<8x8xbf16> to vector<1x8x8xbf16>
    %70 = vector.shape_cast %66 : vector<8x8xbf16> to vector<1x8x8xbf16>
    %71 = vector.shape_cast %67 : vector<8x8xbf16> to vector<1x8x8xbf16>
    %72 = vector.shape_cast %68 : vector<8x8xbf16> to vector<1x8x8xbf16>
    %73 = tpu.concatenate %69, %70, %71, %72 in 0 : vector<1x8x8xbf16>, vector<1x8x8xbf16>, vector<1x8x8xbf16>, vector<1x8x8xbf16> -> vector<4x8x8xbf16>
    "tpu.trace_start"() <{level = 10 : i32, message = "hqd,hkd->hqk"}> : () -> ()
    %cst_26 = arith.constant dense<0.000000e+00> : vector<4x8x8xf32>
    %74 = tpu.matmul %55, %64, %cst_26 {dimension_numbers = #tpu.dot_dimension_numbers<[2], [2], [1], [1], [0, 0, 0, 1, 1, 1], [0], [0]>} : vector<4x8x8xbf16>, vector<4x8x8xbf16>, vector<4x8x8xf32> -> vector<4x8x8xf32>
    "tpu.trace_stop"() : () -> ()
    %cst_27 = arith.constant dense<0xFF800000> : vector<4x8xf32>
    %75 = vector.multi_reduction <maximumf>, %74, %cst_27 [2] : vector<4x8x8xf32> to vector<4x8xf32>
    %76 = vector.shape_cast %75 : vector<4x8xf32> to vector<4x8x1xf32>
    %77 = vector.broadcast %76 : vector<4x8x1xf32> to vector<4x8x8xf32>
    %78 = arith.subf %74, %77 : vector<4x8x8xf32>
    %79 = math.exp %78 : vector<4x8x8xf32>
    %cst_28 = arith.constant dense<0.000000e+00> : vector<4x8xf32>
    %80 = vector.multi_reduction <add>, %79, %cst_28 [2] : vector<4x8x8xf32> to vector<4x8xf32>
    %81 = vector.shape_cast %80 : vector<4x8xf32> to vector<4x8x1xf32>
    %82 = tpu.reciprocal %81 {approx = true} : vector<4x8x1xf32> -> vector<4x8x1xf32>
    %83 = vector.broadcast %82 : vector<4x8x1xf32> to vector<4x8x8xf32>
    %84 = arith.mulf %79, %83 : vector<4x8x8xf32>
    %85 = arith.truncf %84 : vector<4x8x8xf32> to vector<4x8x8xbf16>
    "tpu.trace_start"() <{level = 10 : i32, message = "hqk,hkd->hqd"}> : () -> ()
    %cst_29 = arith.constant dense<0.000000e+00> : vector<4x8x8xf32>
    %86 = tpu.matmul %85, %73, %cst_29 {dimension_numbers = #tpu.dot_dimension_numbers<[2], [1], [1], [2], [0, 0, 0, 1, 1, 2], [0], [0]>} : vector<4x8x8xbf16>, vector<4x8x8xbf16>, vector<4x8x8xf32> -> vector<4x8x8xf32>
    "tpu.trace_stop"() : () -> ()
    %87 = vector.extract_strided_slice %86 {offsets = [0, 0, 0], sizes = [1, 8, 8], strides = [1, 1, 1]} : vector<4x8x8xf32> to vector<1x8x8xf32>
    %88 = vector.shape_cast %87 : vector<1x8x8xf32> to vector<8x8xf32>
    %89 = vector.extract_strided_slice %86 {offsets = [1, 0, 0], sizes = [1, 8, 8], strides = [1, 1, 1]} : vector<4x8x8xf32> to vector<1x8x8xf32>
    %90 = vector.shape_cast %89 : vector<1x8x8xf32> to vector<8x8xf32>
    %91 = vector.extract_strided_slice %86 {offsets = [2, 0, 0], sizes = [1, 8, 8], strides = [1, 1, 1]} : vector<4x8x8xf32> to vector<1x8x8xf32>
    %92 = vector.shape_cast %91 : vector<1x8x8xf32> to vector<8x8xf32>
    %93 = vector.extract_strided_slice %86 {offsets = [3, 0, 0], sizes = [1, 8, 8], strides = [1, 1, 1]} : vector<4x8x8xf32> to vector<1x8x8xf32>
    %94 = vector.shape_cast %93 : vector<1x8x8xf32> to vector<8x8xf32>
    %95 = tpu.concatenate %88, %90, %92, %94 in 1 : vector<8x8xf32>, vector<8x8xf32>, vector<8x8xf32>, vector<8x8xf32> -> vector<8x32xf32>
    %96 = arith.truncf %95 : vector<8x32xf32> to vector<8x32xbf16>
    %c0_30 = arith.constant 0 : index
    %c0_31 = arith.constant 0 : index
    %97 = vector.load %arg10[%c0_30, %c0_31] : memref<32x32xbf16, #tpu.memory_space<vmem>>, vector<32x32xbf16>
    %cst_32 = arith.constant dense<0.000000e+00> : vector<8x32xf32>
    %98 = tpu.matmul %96, %97, %cst_32 {dimension_numbers = #tpu.dot_dimension_numbers<[1], [0], [0], [1], [0, 0, 1, 1], [], []>} : vector<8x32xbf16>, vector<32x32xbf16>, vector<8x32xf32> -> vector<8x32xf32>
    %c0_33 = arith.constant 0 : index
    %c0_34 = arith.constant 0 : index
    %99 = vector.load %arg11[%c0_33, %c0_34] : memref<1x32xf32, #tpu.memory_space<vmem>>, vector<1x32xf32>
    %100 = vector.broadcast %99 : vector<1x32xf32> to vector<8x32xf32>
    %101 = arith.addf %98, %100 : vector<8x32xf32>
    %102 = arith.addf %1, %101 : vector<8x32xf32>
    %c0_35 = arith.constant 0 : index
    %c0_36 = arith.constant 0 : index
    %103 = vector.load %arg12[%c0_35, %c0_36] : memref<1x32xf32, #tpu.memory_space<vmem>>, vector<1x32xf32>
    %c0_37 = arith.constant 0 : index
    %c0_38 = arith.constant 0 : index
    %104 = vector.load %arg13[%c0_37, %c0_38] : memref<1x32xf32, #tpu.memory_space<vmem>>, vector<1x32xf32>
    %cst_39 = arith.constant dense<0.000000e+00> : vector<8xf32>
    %105 = vector.multi_reduction <add>, %102, %cst_39 [1] : vector<8x32xf32> to vector<8xf32>
    %106 = vector.shape_cast %105 : vector<8xf32> to vector<8x1xf32>
    %cst_40 = arith.constant 3.200000e+01 : f32
    %107 = vector.broadcast %cst_40 : f32 to vector<8x1xf32>
    %108 = arith.divf %106, %107 : vector<8x1xf32>
    %109 = vector.broadcast %108 : vector<8x1xf32> to vector<8x32xf32>
    %110 = arith.subf %102, %109 : vector<8x32xf32>
    %111 = arith.mulf %110, %110 : vector<8x32xf32>
    %cst_41 = arith.constant dense<0.000000e+00> : vector<8xf32>
    %112 = vector.multi_reduction <add>, %111, %cst_41 [1] : vector<8x32xf32> to vector<8xf32>
    %113 = vector.shape_cast %112 : vector<8xf32> to vector<8x1xf32>
    %cst_42 = arith.constant 3.200000e+01 : f32
    %114 = vector.broadcast %cst_42 : f32 to vector<8x1xf32>
    %115 = arith.divf %113, %114 : vector<8x1xf32>
    %116 = vector.broadcast %108 : vector<8x1xf32> to vector<8x32xf32>
    %117 = arith.subf %102, %116 : vector<8x32xf32>
    %cst_43 = arith.constant 9.99999974E-6 : f32
    %118 = vector.broadcast %cst_43 : f32 to vector<8x1xf32>
    %119 = arith.addf %115, %118 : vector<8x1xf32>
    %120 = math.rsqrt %119 : vector<8x1xf32>
    %121 = vector.broadcast %120 : vector<8x1xf32> to vector<8x32xf32>
    %122 = arith.mulf %117, %121 : vector<8x32xf32>
    %123 = vector.broadcast %103 : vector<1x32xf32> to vector<8x32xf32>
    %124 = arith.mulf %122, %123 : vector<8x32xf32>
    %125 = vector.broadcast %104 : vector<1x32xf32> to vector<8x32xf32>
    %126 = arith.addf %124, %125 : vector<8x32xf32>
    %127 = arith.truncf %126 : vector<8x32xf32> to vector<8x32xbf16>
    %c0_44 = arith.constant 0 : index
    %c0_45 = arith.constant 0 : index
    %128 = vector.load %arg14[%c0_44, %c0_45] : memref<32x64xbf16, #tpu.memory_space<vmem>>, vector<32x64xbf16>
    %cst_46 = arith.constant dense<0.000000e+00> : vector<8x64xf32>
    %129 = tpu.matmul %127, %128, %cst_46 {dimension_numbers = #tpu.dot_dimension_numbers<[1], [0], [0], [1], [0, 0, 1, 1], [], []>} : vector<8x32xbf16>, vector<32x64xbf16>, vector<8x64xf32> -> vector<8x64xf32>
    %c0_47 = arith.constant 0 : index
    %c0_48 = arith.constant 0 : index
    %130 = vector.load %arg15[%c0_47, %c0_48] : memref<1x64xf32, #tpu.memory_space<vmem>>, vector<1x64xf32>
    %131 = vector.broadcast %130 : vector<1x64xf32> to vector<8x64xf32>
    %132 = arith.addf %129, %131 : vector<8x64xf32>
    %cst_49 = arith.constant 0.000000e+00 : f32
    %133 = vector.broadcast %cst_49 : f32 to vector<8x64xf32>
    %134 = arith.maximumf %132, %133 : vector<8x64xf32>
    %135 = arith.truncf %134 : vector<8x64xf32> to vector<8x64xbf16>
    %c0_50 = arith.constant 0 : index
    %c0_51 = arith.constant 0 : index
    %136 = vector.load %arg16[%c0_50, %c0_51] : memref<64x32xbf16, #tpu.memory_space<vmem>>, vector<64x32xbf16>
    %cst_52 = arith.constant dense<0.000000e+00> : vector<8x32xf32>
    %137 = tpu.matmul %135, %136, %cst_52 {dimension_numbers = #tpu.dot_dimension_numbers<[1], [0], [0], [1], [0, 0, 1, 1], [], []>} : vector<8x64xbf16>, vector<64x32xbf16>, vector<8x32xf32> -> vector<8x32xf32>
    %c0_53 = arith.constant 0 : index
    %c0_54 = arith.constant 0 : index
    %138 = vector.load %arg17[%c0_53, %c0_54] : memref<1x32xf32, #tpu.memory_space<vmem>>, vector<1x32xf32>
    %139 = vector.broadcast %138 : vector<1x32xf32> to vector<8x32xf32>
    %140 = arith.addf %137, %139 : vector<8x32xf32>
    %141 = arith.addf %102, %140 : vector<8x32xf32>
    %c0_55 = arith.constant 0 : index
    %c0_56 = arith.constant 0 : index
    %c0_57 = arith.constant 0 : index
    %142 = vector.load %arg18[%c0_55, %c0_56, %c0_57] : memref<1x8x32xf32, #tpu.memory_space<vmem>>, vector<1x8x32xf32>
    %143 = vector.shape_cast %142 : vector<1x8x32xf32> to vector<8x32xf32>
    %144 = vector.shape_cast %141 : vector<8x32xf32> to vector<1x8x32xf32>
    tpu.vector_store %arg18[%c0_55, %c0_56, %c0_57], %144 {strides = array<i32>} : memref<1x8x32xf32, #tpu.memory_space<vmem>>, vector<1x8x32xf32>,
    return
  }
  func.func @transform_0(%arg0: i32) -> (i32, i32, i32) {
    %c0_i32 = arith.constant 0 : i32
    %c0_i32_0 = arith.constant 0 : i32
    %c0_i32_1 = arith.constant 0 : i32
    return %arg0, %c0_i32, %c0_i32_0 : i32, i32, i32
  }
  func.func @transform_1(%arg0: i32) -> (i32, i32) {
    %c0_i32 = arith.constant 0 : i32
    %c0_i32_0 = arith.constant 0 : i32
    %c0_i32_1 = arith.constant 0 : i32
    return %c0_i32, %c0_i32_0 : i32, i32
  }
  func.func @transform_2(%arg0: i32) -> (i32, i32) {
    %c0_i32 = arith.constant 0 : i32
    %c0_i32_0 = arith.constant 0 : i32
    %c0_i32_1 = arith.constant 0 : i32
    return %c0_i32, %c0_i32_0 : i32, i32
  }
  func.func @transform_3(%arg0: i32) -> (i32, i32) {
    %c0_i32 = arith.constant 0 : i32
    %c0_i32_0 = arith.constant 0 : i32
    %c0_i32_1 = arith.constant 0 : i32
    return %c0_i32, %c0_i32_0 : i32, i32
  }
  func.func @transform_4(%arg0: i32) -> (i32, i32) {
    %c0_i32 = arith.constant 0 : i32
    %c0_i32_0 = arith.constant 0 : i32
    %c0_i32_1 = arith.constant 0 : i32
    return %c0_i32, %c0_i32_0 : i32, i32
  }
  func.func @transform_5(%arg0: i32) -> (i32, i32) {
    %c0_i32 = arith.constant 0 : i32
    %c0_i32_0 = arith.constant 0 : i32
    %c0_i32_1 = arith.constant 0 : i32
    return %c0_i32, %c0_i32_0 : i32, i32
  }
  func.func @transform_6(%arg0: i32) -> (i32, i32) {
    %c0_i32 = arith.constant 0 : i32
    %c0_i32_0 = arith.constant 0 : i32
    %c0_i32_1 = arith.constant 0 : i32
    return %c0_i32, %c0_i32_0 : i32, i32
  }
  func.func @transform_7(%arg0: i32) -> (i32, i32) {
    %c0_i32 = arith.constant 0 : i32
    %c0_i32_0 = arith.constant 0 : i32
    %c0_i32_1 = arith.constant 0 : i32
    return %c0_i32, %c0_i32_0 : i32, i32
  }
  func.func @transform_8(%arg0: i32) -> (i32, i32) {
    %c0_i32 = arith.constant 0 : i32
    %c0_i32_0 = arith.constant 0 : i32
    %c0_i32_1 = arith.constant 0 : i32
    return %c0_i32, %c0_i32_0 : i32, i32
  }
  func.func @transform_9(%arg0: i32) -> (i32, i32) {
    %c0_i32 = arith.constant 0 : i32
    %c0_i32_0 = arith.constant 0 : i32
    %c0_i32_1 = arith.constant 0 : i32
    return %c0_i32, %c0_i32_0 : i32, i32
  }
  func.func @transform_10(%arg0: i32) -> (i32, i32) {
    %c0_i32 = arith.constant 0 : i32
    %c0_i32_0 = arith.constant 0 : i32
    %c0_i32_1 = arith.constant 0 : i32
    return %c0_i32, %c0_i32_0 : i32, i32
  }
  func.func @transform_11(%arg0: i32) -> (i32, i32) {
    %c0_i32 = arith.constant 0 : i32
    %c0_i32_0 = arith.constant 0 : i32
    %c0_i32_1 = arith.constant 0 : i32
    return %c0_i32, %c0_i32_0 : i32, i32
  }
  func.func @transform_12(%arg0: i32) -> (i32, i32) {
    %c0_i32 = arith.constant 0 : i32
    %c0_i32_0 = arith.constant 0 : i32
    %c0_i32_1 = arith.constant 0 : i32
    return %c0_i32, %c0_i32_0 : i32, i32
  }
  func.func @transform_13(%arg0: i32) -> (i32, i32) {
    %c0_i32 = arith.constant 0 : i32
    %c0_i32_0 = arith.constant 0 : i32
    %c0_i32_1 = arith.constant 0 : i32
    return %c0_i32, %c0_i32_0 : i32, i32
  }
  func.func @transform_14(%arg0: i32) -> (i32, i32) {
    %c0_i32 = arith.constant 0 : i32
    %c0_i32_0 = arith.constant 0 : i32
    %c0_i32_1 = arith.constant 0 : i32
    return %c0_i32, %c0_i32_0 : i32, i32
  }
  func.func @transform_15(%arg0: i32) -> (i32, i32) {
    %c0_i32 = arith.constant 0 : i32
    %c0_i32_0 = arith.constant 0 : i32
    %c0_i32_1 = arith.constant 0 : i32
    return %c0_i32, %c0_i32_0 : i32, i32
  }
  func.func @transform_16(%arg0: i32) -> (i32, i32) {
    %c0_i32 = arith.constant 0 : i32
    %c0_i32_0 = arith.constant 0 : i32
    %c0_i32_1 = arith.constant 0 : i32
    return %c0_i32, %c0_i32_0 : i32, i32
  }
  func.func @transform_17(%arg0: i32) -> (i32, i32, i32) {
    %c0_i32 = arith.constant 0 : i32
    %c0_i32_0 = arith.constant 0 : i32
    %c0_i32_1 = arith.constant 0 : i32
    return %arg0, %c0_i32, %c0_i32_0 : i32, i32, i32
  }
}

</mosaic_0001>

<bundles_post_ra>
// kernel: tpu_custom_call.1
= control target key start
LH: loop header
LB: loop body
LE: loop exit
PB: predicated region body
PF: predicated region fallthrough
CT: control target
= control target key end

     0   :  { %s2044_s0 = inlined_call_operand.vmem [shape: f32[2,8,32], index: 0, kind: input, shape index: {}]   ;;  %s2045_s1 = inlined_call_operand.hbm [shape: f32[1,32], index: 1, kind: input, shape index: {}]   ;;  %s2046_s2 = inlined_call_operand.vmem [shape: f32[1,32], index: 2, kind: input, shape index: {}]   ;;  %s2047_s3 = inlined_call_operand.vmem [shape: bf16[32,32], index: 3, kind: input, shape index: {}]   ;;  %s2048_s4 = inlined_call_operand.vmem [shape: f32[1,32], index: 4, kind: input, shape index: {}]   ;;  %s2049_s5 = inlined_call_operand.vmem [shape: bf16[32,32], index: 5, kind: input, shape index: {}]   ;;  %s2050_s6 = inlined_call_operand.vmem [shape: f32[1,32], index: 6, kind: input, shape index: {}]   ;;  %s2051_s7 = inlined_call_operand.hbm [shape: bf16[32,32], index: 7, kind: input, shape index: {}]   ;;  %s2052_s8 = inlined_call_operand.vmem [shape: f32[1,32], index: 8, kind: input, shape index: {}]   ;;  %s2053_s9 = inlined_call_operand.hbm [shape: bf16[32,32], index: 9, kind: input, shape index: {}]   ;;  %s2054_s10 = inlined_call_operand.vmem [shape: f32[1,32], index: 10, kind: input, shape index: {}]   ;;  %s2055_s11 = inlined_call_operand.vmem [shape: f32[1,32], index: 11, kind: input, shape index: {}]   ;;  %s2056_s12 = inlined_call_operand.vmem [shape: f32[1,32], index: 12, kind: input, shape index: {}]   ;;  %s2057_s13 = inlined_call_operand.hbm [shape: bf16[32,64], index: 13, kind: input, shape index: {}]   ;;  %s2058_s14 = inlined_call_operand.vmem [shape: f32[1,64], index: 14, kind: input, shape index: {}]   ;;  %s2059_s15 = inlined_call_operand.vmem [shape: bf16[64,32], index: 15, kind: input, shape index: {}]   ;;  %s2060_s16 = inlined_call_operand.vmem [shape: f32[1,32], index: 16, kind: input, shape index: {}]   ;;  %s2061_s17 = inlined_call_operand.hbm [shape: f32[2,8,32], index: 17, kind: output, shape index: {}]  }
   0x1   :  { %2071 = sst [smem:[#allocation22_spill]] %s2044_s0 }
   0x2   :  { %2072 = sst [smem:[#allocation23_spill]] %s2045_s1 }
   0x3   :  { %2073 = sst [smem:[#allocation24_spill]] %s2051_s7 }
   0x4   :  { %2074 = sst [smem:[#allocation25_spill]] %s2058_s14 }
   0x5   :  { %2075 = sst [smem:[#allocation26_spill]] %s2060_s16 }
   0x6   :  { %2076 = sst [smem:[#allocation27_spill]] %s2061_s17 }
   0x7   :  { %22 = vsyncpa [#allocation3], 0 }
   0x8   :  { %23 = vsyncpa [#allocation6], 0 }
   0x9   :  { %24 = vsyncpa [#allocation9], 0 }
   0xa   :  { %25 = vsyncpa [#allocation4], 0 }
   0xb   :  { %27 = vsyncpa [#allocation4 + $0x1], 0  ;;  %s1800_s24 = smov 0   ;;  %s1802_s25 = smov 0  }
   0xc   :  { %s1804_s26 = smov 0   ;;  %s1806_s27 = smov 0  }
   0xd LB: > { %2077 = sst [smem:[#allocation15_spill]] %s1683_s24  ;;  %s1821_s28 = sadd.s32 4294967295, %s1695_s27   ;;  %s1695_s27 = sphi %s1806_s27, %s2098_s27   ;;  %s1691_s26 = sphi %s1804_s26, %s2100_s26   ;;  %s1687_s25 = sphi %s1802_s25, %s2102_s25   ;;  %s1683_s24 = sphi %s1800_s24, %s2101_s24  }
   0xe   : > { %2078 = sst [smem:[#allocation16_spill]] %s1691_s26  ;;  %s1278_s29 = sadd.s32 4294967294, %s1695_s27  }
   0xf   : > { %2079 = sst [smem:[#allocation17_spill]] %s1695_s27  ;;  %s1825_s0 = sadd.s32 1, %s1695_s27  }
  0x10   : > { %2080 = sst [smem:[#allocation18_spill]] %s1825_s0  ;;  %s402_s30 = sadd.s32 1, %s1691_s26 }
  0x11   : > { %s399_s18 = ssub.s32 %s1695_s27, %s1825_s0  ;;  %p412_p0 = scmp.ne.s32.totalorder %s1691_s26, %s1687_s25 }
  0x12   : > { %p400_p1 = scmp.eq.s32.totalorder %s399_s18, 0  ;;  %p413_p2 = scmp.eq.s32.totalorder %s1821_s28, 1 }
  0x13   : > { %p418_p3 = scmp.ne.s32.totalorder %s1687_s25, %s1683_s24  ;;  %p419_p4 = scmp.eq.s32.totalorder %s1278_s29, 1 }
  0x14   : > { %s1836_s19 = scalar_select %p400_p1, %s1691_s26, %s402_s30  }
  0x15   : > { %p1838_p5 = por %p413_p2, %p412_p0  ;;  %p1842_p6 = por %p419_p4, %p418_p3 }
  0x16   : > { %2081 = sst [smem:[#allocation19_spill]] %s1836_s19  ;;  %p1279_p7 = scmp.ge.s32.totalorder %s1695_s27, 1 }
  0x17   : > { %s2082_s1 = scalar_select %p1838_p5, 1, 0 }
  0x18   : > { %s2084_s20 = scalar_select %p1842_p6, 1, 0 }
  0x19   : > { %2083 = sst [smem:[#allocation20_spill]] %s2082_s1  ;;  %p426_p8 = scmp.lt.s32.totalorder %s1695_s27, 3 }
  0x1a   : > { %2085 = sst [smem:[#allocation21_spill]] %s2084_s20  ;;  %p1415_p9 = scmp.eq.s32.totalorder %s1821_s28, 0 }
  0x1b   : > { %p1849_p10 = pnand %p1279_p7, %p426_p8  ;;  %s2087_s7 = sld [smem:[#allocation24_spill]] }
  0x1c   : > { %s1697_s30 = smov [#allocation5]   ;;  %s2089_s20 = sld [smem:[#allocation23_spill]] }
  0x1d   : > { %p1398_p11 = pneg %p1849_p10  ;;  %s466_s18 = sshll.u32 %s1697_s30, 4  ;;  %s467_s18 = int_to_ptr.vmem [resolvable:$true] %s466_s18 }
  0x1e   : > { %s1698_s22 = smov 64   ;;  %s1699_s23 = smov 4  }
  0x1f   : > { %p1860_p12 = pnand %p1415_p9, %p1398_p11  ;;  %s1700_s30 = smov [#allocation2]  }
  0x20   : > { %s481_s17 = sshll.u32 %s2053_s9, 4  ;;  %s1701_s16 = smov [#allocation7]   ;;  %s482_s17 = int_to_ptr.hbm [resolvable:$true] %s481_s17 }
  0x21   : > { %s464_s29 = sshll.u32 %s2087_s7, 4  ;;  %s440_s7 = sshll.u32 %s1700_s30, 4  ;;  %s465_s29 = int_to_ptr.hbm [resolvable:$true] %s464_s29  ;;  %s441_s7 = int_to_ptr.vmem [resolvable:$true] %s440_s7 }
  0x22   : > { %s438_s24 = sshll.u32 %s2089_s20, 4  ;;  %s504_s20 = sshll.u32 %s2057_s13, 4  ;;  %s439_s24 = int_to_ptr.hbm [resolvable:$true] %s438_s24  ;;  %s505_s20 = int_to_ptr.hbm [resolvable:$true] %s504_s20 }
  0x23   : > { %1404 = dma.hbm_to_vmem [thread:$0]  (!%p1860_p12), %s465_s29, 256, %s467_s18, [#allocation6], %s1698_s22, %s1698_s22, %s1699_s23  }
  0x24   : > { %1401 = dma.hbm_to_vmem [thread:$0]  (!%p1860_p12), %s439_s24, 16, %s441_s7, [#allocation3]  }
  0x25   : > { %s483_s14 = sshll.u32 %s1701_s16, 4  ;;  %s1702_s29 = smov [#allocation8]   ;;  %s484_s14 = int_to_ptr.vmem [resolvable:$true] %s483_s14 }
  0x26   : > { %1407 = dma.hbm_to_vmem [thread:$0]  (!%p1860_p12), %s482_s17, 256, %s484_s14, [#allocation6], %s1698_s22, %s1698_s22, %s1699_s23  }
  0x27   : > { %s506_s18 = sshll.u32 %s1702_s29, 4  ;;  %538 = sbr.rel (%p1849_p10) target bundleno = 1900 (0x76c), region = 88  ;;  %s507_s18 = int_to_ptr.vmem [resolvable:$true] %s506_s18 }
  0x28   : > { %1410 = dma.hbm_to_vmem [thread:$0]  (!%p1860_p12), %s505_s20, 256, %s507_s18, [#allocation9], %s1698_s22, %s1698_s22, %s1699_s23  }
  0x2c   : > { %1666 = dma.done.wait (%p1415_p9), [#allocation3], 16  }
  0x2d   : > { %1668 = vsyncadd (%p1415_p9), [#allocation3], 4294967280 }
  0x2e   : > { %1670 = dma.done.wait (%p1415_p9), [#allocation6], 512  }
  0x2f   : > { %1672 = vsyncadd (%p1415_p9), [#allocation6], 4294966784 }
  0x30   : > { %1674 = dma.done.wait (%p1415_p9), [#allocation9], 256  }
  0x31   : > { %1676 = vsyncadd (%p1415_p9), [#allocation9], 4294967040  ;;  %p605_p13 = scmp.lt.s32.totalorder %s1821_s28, 1  ;;  %s2090_s24 = sld [smem:[#allocation22_spill]]  ;;  %vm613_vm0 = vcmask 261120   ;;  %v1703_v2 = vmov 32.0  }
  0x32   : > { %1479 = vrcp.f32 %v1703_v2  ;;  %v1367_v14 = vld [vmem:[%s2047_s3 + $0x8] sm:$0xff]  ;;  %v1366_v17 = vld [vmem:[%s2047_s3] sm:$0xff]  ;;  %vm779_vm5 = vcmask 64512   ;;  %s1705_s19 = smov 104   ;;  %vm907_vm6 = vcmask 1043456   ;;  %s1706_s1 = smov 112  }
  0x33   : > { %s606_s7 = scalar_select %p605_p13, %s1821_s28, 1  ;;  %v1369_v15 = vld [vmem:[%s2049_s5 + $0x8] sm:$0xff]  ;;  %681 = vmatpush.bf16.msra.mxu0 %v1367_v14  ;;  %v1368_v18 = vld [vmem:[%s2049_s5] sm:$0xff]  ;;  %vm994_vm7 = vcmask 130048   ;;  %vm996_vm8 = vcmask 195584   ;;  %vm1143_vm12 = vcmask 523264  }
  0x34   : > { %v1371_v16 = vld [vmem:[#allocation5 + $0x8] sm:$0xff]  ;;  %714 = vmatpush.bf16.msra.mxu1 %v1369_v15  ;;  %v1370_v19 = vld [vmem:[#allocation5] sm:$0xff]  ;;  %v1469_v29 = vld [vmem:[#allocation2] ss:$0 sm:$0xff]  ;;  %s1707_s21 = smov 8   ;;  %s1708_s22 = smov 16  }
  0x35   : > { %s1291_s14 = sshll.u32 %s606_s7, 3  ;;  %747 = vmatpush.bf16.msra.mxu2 %v1371_v16  ;;  %v1470_v32 = vld [vmem:[%s2046_s2] ss:$0 sm:$0xff]  ;;  %s1709_s23 = smov 24  }
  0x36   : > { %v1471_v36 = vld [vmem:[%s2048_s4] ss:$0 sm:$0xff]  ;;  %s602_s30 = sand.u32 1, %s1687_s25   ;;  %s1363_s0 = sshll.u32 %s1821_s28, 3 }
  0x37   : > { %s608_s27 = scalar_lea.vmem %s2090_s24, %s1291_s14  ;;  %682 = vmatpush.bf16.msra.mxu0 %v1366_v17  ;;  %v1472_v37 = vld [vmem:[%s2050_s6] ss:$0 sm:$0xff]  ;;  %s1290_s26 = sshll.u32 %s602_s30, 3 }
  0x38   : > { %v1900_v0 = vld [vmem:[%s608_s27] sm:$0xff]  ;;  %v1480_v3 = vpop.eup %1479  ;;  %715 = vmatpush.bf16.msra.mxu1 %v1368_v18  ;;  %s1704_s27 = smov 120   ;;  %s2092_s18 = sld [smem:[#allocation26_spill]] }
  0x39   : > { %v614_v1 = vsel %vm613_vm0, %v1900_v0, 0.0  ;;  %v618_v4 = vmul.f32 32.0, %v1480_v3  ;;  %vm622_vm1 = vweird.f32 %v1480_v3  ;;  %748 = vmatpush.bf16.msra.mxu2 %v1370_v19  ;;  %v1473_v44 = vld [vmem:[%s2052_s8] ss:$0 sm:$0xff]  ;;  %s2093_s16 = sld [smem:[#allocation27_spill]]  ;;  %s1163_s28 = scalar_lea.sflag [#allocation4], %s602_s30 }
  0x3a   : > { %615 = vadd.xlane.f32.xlu0 %v614_v1 }
  0x3b   : > { %v619_v5 = vsub.f32 1.0, %v618_v4 }
  0x3d   : > { %v620_v6 = vmul.f32 %v1480_v3, %v619_v5 }
  0x3f   : > { %v621_v7 = vadd.f32 %v1480_v3, %v620_v6  ;;  %s1173_s24 = scalar_lea.hbm %s2093_s16, %s1363_s0 }
  0x41   : > { %v1904_v8 = vsel %vm622_vm1, %v1480_v3, %v621_v7 }
  0xad   : > { %v616_v9 = vpop.xlane.xlu0 %615 }
  0xae   : > { %v624_v10 = vmul.f32 %v1904_v8, %v616_v9 }
  0xb0   : > { %v625_v11 = vsub.f32 %v1900_v0, %v624_v10 }
  0xb2   : > { %v626_v12 = vmul.f32 %v625_v11, %v625_v11 }
  0xb4   : > { %v627_v13 = vsel %vm613_vm0, %v626_v12, 0.0 }
  0xb5   : > { %628 = vadd.xlane.f32.xlu0 %v627_v13 }
 0x128   : > { %v629_v20 = vpop.xlane.xlu0 %628 }
 0x129   : > { %v630_v21 = vmul.f32 %v629_v20, %v1904_v8 }
 0x12b   : > { %v631_v22 = vadd.f32 1e-05, %v630_v21 }
 0x12d   : > { %1481 = vrsqrt.f32 %v631_v22  ;;  %vm638_vm3 = vweird.f32 %v631_v22 }
 0x133   : > { %v1482_v23 = vpop.eup %1481 }
 0x134   : > { %v633_v24 = vmul.f32 %v1482_v23, %v631_v22  ;;  %vm639_vm2 = vweird.f32 %v1482_v23 }
 0x135   : > { %vm640_vm4 = vmor %vm638_vm3, %vm639_vm2 }
 0x136   : > { %v634_v25 = vmul.f32 %v1482_v23, %v633_v24 }
 0x138   : > { %v635_v26 = vmul.f32 0.5, %v634_v25 }
 0x13a   : > { %v636_v27 = vsub.f32 1.5, %v635_v26 }
 0x13c   : > { %v637_v28 = vmul.f32 %v1482_v23, %v636_v27 }
 0x13e   : > { %v641_v30 = vsel %vm640_vm4, %v1482_v23, %v637_v28 }
 0x13f   : > { %v642_v31 = vmul.f32 %v641_v30, %v625_v11 }
 0x141   : > { %v646_v33 = vmul.f32 %v1469_v29, %v642_v31 }
 0x143   : > { %v650_v34 = vadd.f32 %v1470_v32, %v646_v33 }
 0x145   : > { %v651_v35 = vpack.c.bf16 %v650_v34, %v650_v34 }
 0x147   : > { %1300 = vmatmul.msk.bf16.vlgmr.msra.gmra.mxu0 %vm613_vm0, %v651_v35  ;;  %1309 = vmatmul.msk.bf16.vlgmr.msra.gmra.mxu1 %vm613_vm0, %v651_v35 }
 0x148   : > { %1318 = vmatmul.msk.bf16.vlgmr.msra.gmra.mxu2 %vm613_vm0, %v651_v35 }
 0x1c4   : > { %v684_v38 = vpop.f32.mrf.mxu0  ;;  %v717_v39 = vpop.f32.mrf.mxu1 }
 0x1c5   : > { %v685_v40 = vadd.f32 %v1471_v36, %v684_v38  ;;  %v718_v41 = vadd.f32 %v1472_v37, %v717_v39 }
 0x1c7   : > { %v754_v42 = vmul.f32 0.35355338, %v685_v40  ;;  %v756_v43 = vpack.c.bf16 %v718_v41, %v718_v41 }
 0x1c9   : > { %v755_v45 = vpack.c.bf16 %v754_v42, %v754_v42  ;;  %766 = vrot.lane.b32.xlu2 %v756_v43, %s1704_s27  ;;  %770 = vrot.lane.b32.xlu1 %v756_v43, %s1705_s19  ;;  %v784_v46 = vsel %vm779_vm5, %v756_v43, 0 }
 0x1ca   : > { %793 = vmatpush.bf16.xpose.msra.mxu3 %v784_v46 }
 0x1cb   : > { %v750_v47 = vpop.f32.mrf.mxu2  ;;  %759 = vrot.lane.b32.xlu0 %v755_v45, %s1704_s27 }
 0x1cc   : > { %v751_v48 = vadd.f32 %v1473_v44, %v750_v47  ;;  %v686_v49 = vpop.f32.mrf.mxu0  ;;  %v719_v50 = vpop.f32.mrf.mxu1 }
 0x1ce   : > { %v1941_v51 = vpack.c.bf16 %v751_v48, %v751_v48 }
 0x1d0   : > { %v909_v52 = vsel %vm907_vm6, %v1941_v51, 0 }
 0x1d1   : > { %768 = vrot.lane.b32.xlu2 %v756_v43, %s1706_s1  ;;  %763 = vrot.lane.b32.xlu1 %v755_v45, %s1705_s19 }
 0x1d2   : > { %918 = vmatpush.bf16.msrb.mxu3 %v909_v52 }
 0x1d3   : > { %1319 = vmatmul.msk.bf16.vlgmr.msra.gmra.mxu3 %vm779_vm5, %v755_v45  ;;  %v752_v53 = vpop.f32.mrf.mxu2 }
 0x1d9   : > { %761 = vrot.lane.b32.xlu1 %v755_v45, %s1706_s1 }
 0x223   : > { %v767_v54 = vpop.permute.xlu2 %766 }
 0x224   : > { %v803_v55 = vsel %vm779_vm5, %v767_v54, 0 }
 0x225   : > { %812 = vmatpush.bf16.xpose.msrb.mxu0 %v803_v55 }
 0x22b   : > { %v769_v56 = vpop.permute.xlu2 %768 }
 0x22c   : > { %v822_v57 = vsel %vm779_vm5, %v769_v56, 0 }
 0x22d   : > { %831 = vmatpush.bf16.xpose.msrb.mxu1 %v822_v57 }
 0x23b   : > { %v771_v58 = vpop.permute.xlu1 %770 }
 0x23c   : > { %v841_v59 = vsel %vm779_vm5, %v771_v58, 0 }
 0x23d   : > { %850 = vmatpush.bf16.xpose.msrb.mxu2 %v841_v59  ;;  %v760_v60 = vpop.permute.xlu0 %759 }
 0x23e   : > { %1320 = vmatmul.msk.bf16.vlgmr.msrb.gmra.mxu0 %vm779_vm5, %v760_v60 }
 0x243   : > { %v764_v61 = vpop.permute.xlu1 %763 }
 0x244   : > { %1322 = vmatmul.msk.bf16.vlgmr.msrb.gmra.mxu2 %vm779_vm5, %v764_v61 }
 0x24b   : > { %v762_v62 = vpop.permute.xlu1 %761 }
 0x24c   : > { %1321 = vmatmul.msk.bf16.vlgmr.msrb.gmra.mxu1 %vm779_vm5, %v762_v62 }
 0x256   : > { %v795_v63 = vpop.f32.mrf.mxu3 }
 0x257   : > { %v856_v11 = vsel %vm779_vm5, %v795_v63, -inf }
 0x25e   : > { %v797_v1 = vpop.f32.mrf.mxu3 }
 0x25f   : > { %v1372_v1 = vld [vmem:[#allocation7] sm:$0xff] }
 0x2bb   : > { %v814_v2 = vpop.f32.mrf.mxu0 }
 0x2bc   : > { %v859_v3 = vsel %vm779_vm5, %v814_v2, -inf }
 0x2bd   : > { %860 = vmax.xlane.f32.xlu1 %v859_v3 }
 0x2c3   : > { %v816_v4 = vpop.f32.mrf.mxu0 }
 0x2c7   : > { %v852_v5 = vpop.f32.mrf.mxu2 }
 0x2c8   : > { %v865_v6 = vsel %vm779_vm5, %v852_v5, -inf }
 0x2c9   : > { %866 = vmax.xlane.f32.xlu2 %v865_v6  ;;  %v833_v7 = vpop.f32.mrf.mxu1 }
 0x2ca   : > { %v862_v9 = vsel %vm779_vm5, %v833_v7, -inf }
 0x2cb   : > { %863 = vmax.xlane.f32.xlu0 %v862_v9 }
 0x2cf   : > { %v854_v10 = vpop.f32.mrf.mxu2 }
 0x2d0   : > { %v1474_v10 = vld [vmem:[%s2054_s10] ss:$0 sm:$0xff] }
 0x2d1   : > { %v835_v12 = vpop.f32.mrf.mxu1  ;;  %857 = vmax.xlane.f32.xlu2 %v856_v11 }
 0x2df   : > { %773 = vrot.lane.b32.xlu0 %v1941_v51, %s1704_s27  ;;  %s604_s27 = scalar_lea.vmem [#allocation10], %s1290_s26  ;;  %s1641_s26 = scalar_lea.hbm %s2093_s16, 16 }
 0x330   : > { %v861_v13 = vpop.xlane.xlu1 %860 }
 0x331   : > { %v869_v14 = vsub.f32 %v814_v2, %v861_v13 }
 0x333   : > { %v874_v15 = vmul.f32 1.442695, %v869_v14 }
 0x335   : > { %1483 = vpow2.f32 %v874_v15 }
 0x33b   : > { %v1484_v16 = vpop.eup %1483 }
 0x33c   : > { %v883_v17 = vsel %vm779_vm5, %v1484_v16, 0.0  ;;  %v867_v18 = vpop.xlane.xlu2 %866 }
 0x33d   : > { %884 = vadd.xlane.f32.xlu1 %v883_v17  ;;  %v871_v21 = vsub.f32 %v852_v5, %v867_v18 }
 0x33e   : > { %v864_v19 = vpop.xlane.xlu0 %863 }
 0x33f   : > { %v870_v20 = vsub.f32 %v833_v7, %v864_v19  ;;  %v878_v23 = vmul.f32 1.442695, %v871_v21  ;;  %v1375_v21 = vld [vmem:[#allocation8 + $0x8] sm:$0xff] }
 0x341   : > { %v876_v22 = vmul.f32 1.442695, %v870_v20 }
 0x343   : > { %1485 = vpow2.f32 %v876_v22  ;;  %v1374_v22 = vld [vmem:[#allocation8] sm:$0xff] }
 0x344   : > { %v858_v24 = vpop.xlane.xlu2 %857  ;;  %1487 = vpow2.f32 %v878_v23 }
 0x345   : > { %v868_v25 = vsub.f32 %v795_v63, %v858_v24  ;;  %v1373_v63 = vld [vmem:[#allocation7 + $0x8] sm:$0xff] }
 0x346   : > { %1028 = vmatpush.bf16.msra.mxu3 %v1373_v63 }
 0x347   : > { %v872_v26 = vmul.f32 1.442695, %v868_v25  ;;  %v1378_v25 = vld [vmem:[%s2059_s15 + $0x10] sm:$0xff] }
 0x349   : > { %v1486_v27 = vpop.eup %1485  ;;  %1489 = vpow2.f32 %v872_v26 }
 0x34a   : > { %v886_v28 = vsel %vm779_vm5, %v1486_v27, 0.0  ;;  %v1488_v29 = vpop.eup %1487  ;;  %1029 = vmatpush.bf16.msra.mxu3 %v1372_v1 }
 0x34b   : > { %887 = vadd.xlane.f32.xlu2 %v886_v28  ;;  %v889_v34 = vsel %vm779_vm5, %v1488_v29, 0.0 }
 0x34f   : > { %v1490_v30 = vpop.eup %1489 }
 0x350   : > { %v880_v31 = vsel %vm779_vm5, %v1490_v30, 0.0 }
 0x351   : > { %v774_v32 = vpop.permute.xlu0 %773  ;;  %881 = vadd.xlane.f32.xlu0 %v880_v31 }
 0x352   : > { %v928_v33 = vsel %vm907_vm6, %v774_v32, 0 }
 0x353   : > { %937 = vmatpush.bf16.msra.mxu0 %v928_v33  ;;  %890 = vadd.xlane.f32.xlu2 %v889_v34 }
 0x356   : > { %777 = vrot.lane.b32.xlu1 %v1941_v51, %s1705_s19  ;;  %s1175_s19 = sshll.u32 %s604_s27, 4  ;;  %s1176_s19 = int_to_ptr.vmem [resolvable:$true] %s1175_s19 }
 0x357   : > { %1098 = vmatpush.bf16.msrb.mxu0 %v1375_v21 }
 0x35b   : > { %1099 = vmatpush.bf16.msrb.mxu0 %v1374_v22 }
 0x36b   : > { %775 = vrot.lane.b32.xlu2 %v1941_v51, %s1706_s1  ;;  %s1177_s1 = sshll.u32 %s1173_s24, 4  ;;  %s1178_s1 = int_to_ptr.hbm [resolvable:$true] %s1177_s1 }
 0x3b0   : > { %v885_v35 = vpop.xlane.xlu1 %884 }
 0x3b1   : > { %1491 = vrcp.f32 %v885_v35  ;;  %v1476_v35 = vld [vmem:[%s2056_s12] ss:$0 sm:$0xff] }
 0x3b7   : > { %v1492_v36 = vpop.eup %1491 }
 0x3b8   : > { %v897_v37 = vmul.f32 %v1492_v36, %v1484_v16 }
 0x3ba   : > { %v901_v38 = vpack.c.bf16 %v897_v37, %v897_v37 }
 0x3bc   : > { %1324 = vmatmul.msk.bf16.vlgmr.msra.gmra.mxu0 %vm779_vm5, %v901_v38 }
 0x3be   : > { %v888_v39 = vpop.xlane.xlu2 %887 }
 0x3bf   : > { %1493 = vrcp.f32 %v888_v39  ;;  %v1377_v39 = vld [vmem:[%s2059_s15 + $0x8] sm:$0xff] }
 0x3c4   : > { %v882_v40 = vpop.xlane.xlu0 %881 }
 0x3c5   : > { %1495 = vrcp.f32 %v882_v40  ;;  %v1494_v44 = vpop.eup %1493  ;;  %v1376_v40 = vld [vmem:[%s2059_s15] sm:$0xff] }
 0x3c6   : > { %v891_v41 = vpop.xlane.xlu2 %890  ;;  %v898_v48 = vmul.f32 %v1494_v44, %v1486_v27 }
 0x3c7   : > { %1497 = vrcp.f32 %v891_v41 }
 0x3c8   : > { %v778_v42 = vpop.permute.xlu1 %777  ;;  %v902_v54 = vpack.c.bf16 %v898_v48, %v898_v48 }
 0x3c9   : > { %v966_v43 = vsel %vm907_vm6, %v778_v42, 0 }
 0x3ca   : > { %975 = vmatpush.bf16.msra.mxu2 %v966_v43 }
 0x3cb   : > { %v1496_v45 = vpop.eup %1495 }
 0x3cc   : > { %v896_v46 = vmul.f32 %v1496_v45, %v1490_v30 }
 0x3cd   : > { %v1498_v47 = vpop.eup %1497 }
 0x3ce   : > { %v900_v49 = vpack.c.bf16 %v896_v46, %v896_v46  ;;  %v899_v50 = vmul.f32 %v1498_v47, %v1488_v29  ;;  %v776_v51 = vpop.permute.xlu2 %775  ;;  %v1478_v47 = vld [vmem:[%s2092_s18] ss:$0 sm:$0xff] }
 0x3cf   : > { %v947_v52 = vsel %vm907_vm6, %v776_v51, 0 }
 0x3d0   : > { %v903_v53 = vpack.c.bf16 %v899_v50, %v899_v50  ;;  %1323 = vmatmul.msk.bf16.vlgmr.msrb.gmra.mxu3 %vm779_vm5, %v900_v49  ;;  %956 = vmatpush.bf16.msra.mxu1 %v947_v52 }
 0x3d2   : > { %1326 = vmatmul.msk.bf16.vlgmr.msra.gmra.mxu2 %vm779_vm5, %v903_v53 }
 0x3d3   : > { %1325 = vmatmul.msk.bf16.vlgmr.msra.gmra.mxu1 %vm779_vm5, %v902_v54 }
 0x439   : > { %v939_v55 = vpop.f32.mrf.mxu0 }
 0x43a   : > { %982 = vrot.lane.b32.xlu1 %v939_v55, %s1707_s21  ;;  %s1635_s21 = sshra.s32 %s1178_s1, 4  ;;  %s1636_s21 = int_to_ptr.hbm [resolvable:$true] %s1635_s21 }
 0x43b   : > { %p1642_p3 = scmp.lt.s32.totalorder %s1636_s21, %s2093_s16 }
 0x441   : > { %v941_v56 = vpop.f32.mrf.mxu0 }
 0x450   : > { %v958_v57 = vpop.f32.mrf.mxu1 }
 0x451   : > { %986 = vrot.lane.b32.xlu2 %v958_v57, %s1708_s22  ;;  %s1637_s22 = scalar_lea.hbm %s1636_s21, 8 }
 0x452   : > { %p1638_p0 = scmp.ne.s32.totalorder %s1636_s21, %s1637_s22  ;;  %p1643_p4 = scmp.lt.s32.totalorder %s1641_s26, %s1637_s22 }
 0x453   : > { %v920_v58 = vpop.f32.mrf.mxu3 }
 0x454   : > { %p1639_p1 = pnand %p1638_p0, %p1838_p5  ;;  %p1644_p7 = por %p1643_p4, %p1642_p3 }
 0x455   : > { %v977_v59 = vpop.f32.mrf.mxu2 }
 0x456   : > { %990 = vrot.lane.b32.xlu1 %v977_v59, %s1709_s23  ;;  %s2091_s23 = sld [smem:[#allocation25_spill]]  ;;  %p1640_p2 = pneg %p1639_p1 }
 0x458   : > { %v960_v60 = vpop.f32.mrf.mxu1  ;;  %p1645_p8 = pnand %p1644_p7, %p1640_p2 }
 0x45b   : > { %v922_v61 = vpop.f32.mrf.mxu3 }
 0x45c   : > { %v1477_v41 = vld [vmem:[%s2091_s23] ss:$0 sm:$0xff] }
 0x45d   : > { %v979_v62 = vpop.f32.mrf.mxu2 }
 0x4ab   : > { %v987_v4 = vpop.permute.xlu2 %986 }
 0x4ac   : > { %v983_v2 = vpop.permute.xlu1 %982 }
 0x4ad   : > { %v993_v3 = vsel %vm779_vm5, %v920_v58, %v983_v2 }
 0x4ae   : > { %v995_v6 = vsel %vm994_vm7, %v993_v3, %v987_v4 }
 0x4c8   : > { %v991_v5 = vpop.permute.xlu1 %990 }
 0x4c9   : > { %v997_v7 = vsel %vm996_vm8, %v995_v6, %v991_v5 }
 0x4ca   : > { %v998_v9 = vpack.c.bf16 %v997_v7, %v997_v7 }
 0x4cc   : > { %1335 = vmatmul.msk.bf16.vlgmr.msra.gmra.mxu3 %vm613_vm0, %v998_v9 }
 0x54f   : > { %v1031_v11 = vpop.f32.mrf.mxu3 }
 0x550   : > { %v1032_v12 = vadd.f32 %v1474_v10, %v1031_v11 }
 0x552   : > { %v1035_v13 = vadd.f32 %v1032_v12, %v1900_v0  ;;  %v1379_v0 = vld [vmem:[%s2059_s15 + $0x18] sm:$0xff] }
 0x553   : > { %1151 = vmatpush.bf16.msrb.mxu1 %v1379_v0 }
 0x554   : > { %v1038_v14 = vsel %vm613_vm0, %v1035_v13, 0.0 }
 0x555   : > { %1039 = vadd.xlane.f32.xlu2 %v1038_v14 }
 0x557   : > { %v1033_v15 = vpop.f32.mrf.mxu3  ;;  %1152 = vmatpush.bf16.msrb.mxu1 %v1378_v25 }
 0x55b   : > { %1153 = vmatpush.bf16.msrb.mxu1 %v1377_v39 }
 0x55f   : > { %1154 = vmatpush.bf16.msrb.mxu1 %v1376_v40 }
 0x5c8   : > { %v1040_v16 = vpop.xlane.xlu2 %1039 }
 0x5c9   : > { %v1041_v17 = vmul.f32 %v1040_v16, %v1904_v8 }
 0x5cb   : > { %v1042_v18 = vsub.f32 %v1035_v13, %v1041_v17 }
 0x5cd   : > { %v1043_v19 = vmul.f32 %v1042_v18, %v1042_v18 }
 0x5cf   : > { %v1044_v20 = vsel %vm613_vm0, %v1043_v19, 0.0 }
 0x5d0   : > { %1045 = vadd.xlane.f32.xlu1 %v1044_v20 }
 0x643   : > { %v1046_v23 = vpop.xlane.xlu1 %1045 }
 0x644   : > { %v1047_v24 = vmul.f32 %v1046_v23, %v1904_v8  ;;  %v1475_v8 = vld [vmem:[%s2055_s11] ss:$0 sm:$0xff] }
 0x646   : > { %v1048_v26 = vadd.f32 1e-05, %v1047_v24 }
 0x648   : > { %1499 = vrsqrt.f32 %v1048_v26  ;;  %vm1055_vm10 = vweird.f32 %v1048_v26 }
 0x64e   : > { %v1500_v27 = vpop.eup %1499 }
 0x64f   : > { %v1050_v28 = vmul.f32 %v1500_v27, %v1048_v26  ;;  %vm1056_vm9 = vweird.f32 %v1500_v27 }
 0x650   : > { %vm1057_vm11 = vmor %vm1055_vm10, %vm1056_vm9 }
 0x651   : > { %v1051_v29 = vmul.f32 %v1500_v27, %v1050_v28 }
 0x653   : > { %v1052_v30 = vmul.f32 0.5, %v1051_v29 }
 0x655   : > { %v1053_v31 = vsub.f32 1.5, %v1052_v30 }
 0x657   : > { %v1054_v32 = vmul.f32 %v1500_v27, %v1053_v31 }
 0x659   : > { %v1058_v33 = vsel %vm1057_vm11, %v1500_v27, %v1054_v32 }
 0x65a   : > { %v1059_v34 = vmul.f32 %v1058_v33, %v1042_v18 }
 0x65c   : > { %v1063_v36 = vmul.f32 %v1475_v8, %v1059_v34 }
 0x65e   : > { %v1067_v37 = vadd.f32 %v1476_v35, %v1063_v36 }
 0x660   : > { %v1068_v38 = vpack.c.bf16 %v1067_v37, %v1067_v37 }
 0x662   : > { %1344 = vmatmul.msk.bf16.vlgmr.msrb.gmra.mxu0 %vm613_vm0, %v1068_v38 }
 0x6df   : > { %v1101_v42 = vpop.f32.mrf.mxu0 }
 0x6e0   : > { %v1102_v43 = vadd.f32 %v1477_v41, %v1101_v42 }
 0x6e2   : > { %v1105_v44 = vmax.f32 %v1102_v43, 0.0 }
 0x6e4   : > { %v1106_v45 = vpack.c.bf16 %v1105_v44, %v1105_v44 }
 0x6e6   : > { %1361 = vmatmul.msk.bf16.vlgmr.msrb.gmra.mxu1 %vm1143_vm12, %v1106_v45 }
 0x6e7   : > { %v1103_v46 = vpop.f32.mrf.mxu0 }
 0x763   : > { %v1156_v48 = vpop.f32.mrf.mxu1 }
 0x764   : > { %v1157_v49 = vadd.f32 %v1478_v47, %v1156_v48 }
 0x766   : > { %v1160_v50 = vadd.f32 %v1157_v49, %v1035_v13 }
 0x768   : > { %1161 = vst.msk [vmem:[%s604_s27] sm:$0xff] %vm613_vm0, %v1160_v50 }
 0x769   : > { %1648 = shalt.err (!%p1645_p8)
}
 0x76a   : > { %1396 = dma.vmem_to_hbm [thread:$0]  (%p1838_p5), %s1176_s19, 128, %s1178_s1, %s1163_s28  }
 0x76b   : > { %v1158_v51 = vpop.f32.mrf.mxu1 }
 0x76c PF: > { %s2095_s30 = sld [smem:[#allocation17_spill]] }
 0x76d   : > { %s2096_s18 = sld [smem:[#allocation15_spill]] }
 0x772   : > { %p1423_p9 = scmp.ge.s32.totalorder %s2095_s30, 2 }
 0x773   : > { %s1189_s14 = sand.u32 1, %s2096_s18  }
 0x774   : > { %p1412_p10 = pnand %p1423_p9, %p1842_p6  ;;  %s1190_s24 = scalar_lea.sflag [#allocation4], %s1189_s14 }
 0x776   : > { %p1413_p11 = pneg %p1412_p10 }
 0x778   : > { %1678 = dma.done.wait (%p1413_p11), %s1190_s24, 128  }
 0x779   : > { %1680 = vsyncadd (%p1413_p11), %s1190_s24, 4294967168  ;;  %s2098_s27 = sld [smem:[#allocation18_spill]]  ;;  %s2101_s24 = smov %s1687_s25 }
 0x77a   : > { %s2099_s21 = sld [smem:[#allocation16_spill]] }
 0x77b   : > { %s2100_s26 = sld [smem:[#allocation19_spill]] }
 0x77f   : > { %p30_p12 = scmp.ge.s32.totalorder %s2098_s27, 4  }
 0x780   : > { %s2102_s25 = smov %s2099_s21 }
 0x781   :  { %32 = sbr.rel (!%p30_p12) target bundleno = 13 (0xd), region = 140 }
 0x786   :  { %1196 = vsyncpa [#allocation3], 1 }
 0x787   :  { %1198 = vsyncpa [#allocation3 + $0x1], 1 }
 0x788   :  { %1199 = vsyncpa [#allocation6], 1 }
 0x789   :  { %1200 = vsyncpa [#allocation9], 1 }
 0x78a   :  { %1201 = vsyncpa [#allocation4], 1 }
 0x78b   :  { %1203 = vsyncpa [#allocation4 + $0x1], 1 }

</bundles_post_ra>
